<compile_context>
chip_gen: v7x
topology: tpu7x:2x2x1
jax: 0.10.0
libtpu: 0.0.40
codegen_flags: <defaults>
</compile_context>

<pallas_src>
import math
import numpy as np
import jax
import jax.numpy as jnp
from jax.experimental import pallas as pl
from jax.experimental.pallas import tpu as pltpu


# ----------------------------- schedule (host, float64) -----------------------------

def make_beta_schedule(n_timestep, cosine_s=0.008):
    timesteps = np.arange(n_timestep + 1, dtype=np.float64) / n_timestep + cosine_s
    alphas = timesteps / (1 + cosine_s) * math.pi / 2
    alphas = np.cos(alphas) ** 2
    alphas = alphas / alphas[0]
    betas = 1 - alphas[1:] / alphas[:-1]
    betas = np.clip(betas, a_min=None, a_max=0.999)
    return betas


# ----------------------------- Pallas kernel -----------------------------

def diff_kernel(gamma_ref,     # SMEM (B,) f32                     sample_gammas
                act_ref,       # VMEM (3C, B*S) f32                [y_cond; y_0; noise]
                w1_ref,        # VMEM (Hd, 3C+2) f32               [W1a^T | W1b^T | W1b^T | we^T | be^T]
                w2_ref,        # VMEM (C, Hd+1) f32                [W2^T | b2^T]
                loss_ref):     # SMEM out (1, 1) f32               sum of squared error
    KC, BS = act_ref.shape                     # KC = 3*C
    C = KC // 3
    Hd = w1_ref.shape[0]
    B = gamma_ref.shape[0]
    S = BS // B

    # Per-lane sample_gamma (lanes are batch-major: lane // S == batch index).
    lane = jax.lax.broadcasted_iota(jnp.int32, (1, BS), 1)
    g_lanes = jnp.full((1, BS), gamma_ref[0], dtype=jnp.float32)
    for b in range(1, B):                      # B is tiny; static unroll of scalar reads
        g_lanes = jnp.where(lane >= b * S, gamma_ref[b], g_lanes)
    sqrt_g = jnp.sqrt(g_lanes)                 # (1, BS)
    sqrt_1mg = jnp.sqrt(1.0 - g_lanes)         # (1, BS)

    # q_sample + channel concat folded into the rhs of a single MXU dot:
    #   rhs rows = [y_cond ; sqrt(g)*y_0 ; sqrt(1-g)*noise]
    act = act_ref[...]                         # (3C, BS)
    row = jax.lax.broadcasted_iota(jnp.int32, (KC, BS), 0)
    sg_full = jnp.broadcast_to(sqrt_g, (KC, BS))
    s1mg_full = jnp.broadcast_to(sqrt_1mg, (KC, BS))
    scale = jnp.where(row < C, jnp.float32(1.0),
                      jnp.where(row < 2 * C, sg_full, s1mg_full))
    rhs = act * scale                          # (3C, BS)

    # First 1x1 conv: lhs = [W1a^T | W1b^T | W1b^T]  (the duplicated W1b^T block
    # absorbs the y_0 / noise split), N = B*S = 512 lane-dense, K = 3C.
    w1 = w1_ref[:, :KC]                        # (Hd, 3C)
    weT = w1_ref[:, KC:KC + 1]                 # (Hd, 1)
    beT = w1_ref[:, KC + 1:KC + 2]             # (Hd, 1)
    h = jnp.dot(w1, rhs, preferred_element_type=jnp.float32)   # (Hd, BS)
    h = h + weT * g_lanes + beT                # gamma-conditioned bias (cheap VALU filler)
    h = jax.nn.gelu(h, approximate=True)

    # Second 1x1 conv: K = Hd on the MXU, lane-dense N = B*S.
    w2 = w2_ref[:, :Hd]                        # (C, Hd)
    b2 = w2_ref[:, Hd:Hd + 1]                  # (C, 1)
    noise_hat = jnp.dot(w2, h, preferred_element_type=jnp.float32) + b2   # (C, BS)

    # MSE loss numerator: single reduction at the end (mean taken in the wrapper).
    nz = act[2 * C:3 * C, :]                   # (C, BS)
    d = nz - noise_hat
    loss_ref[0, 0] = jnp.sum(d * d)


# ----------------------------- host-side packing (once, outside the step) ----------

def pack_diff_params(params):
    """Pre-transpose and pack the 6 tiny weight tensors into 2 VMEM slabs."""
    w1a, w1b, we, be, w2, b2 = params
    w1cat = jnp.concatenate(
        [w1a.T, w1b.T, w1b.T, we.T, be.T], axis=1).astype(jnp.float32)   # (Hd, 3C+2)
    w2cat = jnp.concatenate([w2.T, b2.T], axis=1).astype(jnp.float32)    # (C, Hd+1)
    return w1cat, w2cat


# ----------------------------- wrapper -----------------------------

def diff_forward_loss(y0_nchw, ycond_nchw, noise_nchw, sample_gammas, packed_params):
    """Returns scalar MSE loss. Inputs are NCHW (torch convention)."""
    B, C, H, W = y0_nchw.shape
    S = H * W
    BS = B * S
    w1cat, w2cat = packed_params
    Hd = w1cat.shape[0]

    # One activation slab: (3C, B*S), channels on sublanes, batch x spatial on lanes.
    act = jnp.stack([ycond_nchw, y0_nchw, noise_nchw], axis=0)          # (3, B, C, H, W)
    act = act.reshape(3, B, C, S).transpose(0, 2, 1, 3)                 # (3, C, B, S)
    act = act.reshape(3 * C, BS).astype(jnp.float32)

    g = sample_gammas.reshape(B).astype(jnp.float32)

    vmem = pl.BlockSpec(memory_space=pltpu.MemorySpace.VMEM)
    smem = pl.BlockSpec(memory_space=pltpu.MemorySpace.SMEM)

    flops = BS * (2 * Hd * 3 * C + 2 * C * Hd + 10 * Hd + 10 * C)
    bytes_accessed = (act.size + w1cat.size + w2cat.size + B) * 4 + 4

    out = pl.pallas_call(
        diff_kernel,
        out_shape=jax.ShapeDtypeStruct((1, 1), jnp.float32),
        in_specs=[smem, vmem, vmem, vmem],
        out_specs=smem,
        cost_estimate=pl.CostEstimate(
            flops=flops,
            transcendentals=BS * (Hd + 2),
            bytes_accessed=bytes_accessed),
    )(g, act, w1cat, w2cat)

    return out[0, 0] / (B * S * C)


# ----------------------------- pure-JAX reference -----------------------------

def diff_forward_loss_ref(y0_nchw, ycond_nchw, noise_nchw, sample_gammas, params):
    B, C, H, W = y0_nchw.shape
    S = H * W
    w1a, w1b, we, be, w2, b2 = params
    to_bsc = lambda x: jnp.transpose(x, (0, 2, 3, 1)).reshape(B, S, C).astype(jnp.float32)
    y0, yc, nz = to_bsc(y0_nchw), to_bsc(ycond_nchw), to_bsc(noise_nchw)
    g = sample_gammas.reshape(B, 1, 1).astype(jnp.float32)
    y_noisy = jnp.sqrt(g) * y0 + jnp.sqrt(1.0 - g) * nz
    emb = g * we[None] + be[None]
    h = yc @ w1a + y_noisy @ w1b + emb
    h = jax.nn.gelu(h, approximate=True)
    noise_hat = h @ w2 + b2[None]
    return jnp.mean((nz - noise_hat) ** 2)


# ----------------------------- main -----------------------------

if __name__ == "__main__":
    B, C, H, W = 2, 4, 16, 16
    Hd = 32
    n_timestep = 32
    cosine_s = 0.008

    # noise schedule (same math as set_new_noise_schedule)
    betas = make_beta_schedule(n_timestep, cosine_s)
    alphas = 1.0 - betas
    gammas = jnp.asarray(np.cumprod(alphas, axis=0), dtype=jnp.float32)   # (T,)
    num_timesteps = betas.shape[0]

    key = jax.random.PRNGKey(0)
    k_y0, k_yc, k_nz, k_t, k_u, k_w1, k_we, k_w2 = jax.random.split(key, 8)

    y_0 = jax.random.normal(k_y0, (B, C, H, W), dtype=jnp.float32)
    y_cond = jax.random.normal(k_yc, (B, C, H, W), dtype=jnp.float32)
    noise = jax.random.normal(k_nz, (B, C, H, W), dtype=jnp.float32)

    # t ~ randint(1, T), sample_gammas = (g[t]-g[t-1])*U + g[t-1]
    # TODO(synk): torch RNG (randint/rand/randn) has no in-kernel equivalent matching
    # the module's generator; sampling is done here with jax.random (same semantics).
    t = jax.random.randint(k_t, (B,), 1, num_timesteps)
    u = jax.random.uniform(k_u, (B, 1), dtype=jnp.float32)
    gamma_t1 = gammas[t - 1][:, None]
    gamma_t2 = gammas[t][:, None]
    sample_gammas = (gamma_t2 - gamma_t1) * u + gamma_t1                  # (B, 1)

    # deterministic denoise_fn parameters (tiny noise-conditioned channel MLP)
    w1 = 0.1 * jax.random.normal(k_w1, (2 * C, Hd), dtype=jnp.float32)
    w1a, w1b = w1[:C], w1[C:]
    we = 0.1 * jax.random.normal(k_we, (1, Hd), dtype=jnp.float32)
    be = jnp.zeros((1, Hd), dtype=jnp.float32)
    w2 = 0.1 * jax.random.normal(k_w2, (Hd, C), dtype=jnp.float32)
    b2 = jnp.zeros((1, C), dtype=jnp.float32)
    params = (w1a, w1b, we, be, w2, b2)

    # Pack/transpose the parameters ONCE (outside the per-step wrapper).
    packed_params = jax.tree.map(jax.block_until_ready, pack_diff_params(params))

    loss = diff_forward_loss(y_0, y_cond, noise, sample_gammas, packed_params)
    loss = jax.block_until_ready(loss)

    loss_ref = jax.block_until_ready(
        diff_forward_loss_ref(y_0, y_cond, noise, sample_gammas, params))

    assert np.isfinite(float(loss))
    np.testing.assert_allclose(float(loss), float(loss_ref), rtol=2e-2, atol=1e-4)

    print("KERNEL_OK")
</pallas_src>

<mosaic_0001>
module attributes {stable_mosaic.version = 11 : i64} {
  func.func @diff_kernel(%arg0: memref<2xf32, #tpu.memory_space<smem>>, %arg1: memref<12x512xf32, #tpu.memory_space<vmem>>, %arg2: memref<32x14xf32, #tpu.memory_space<vmem>>, %arg3: memref<4x33xf32, #tpu.memory_space<vmem>>, %arg4: memref<1x1xf32, #tpu.memory_space<smem>>) attributes {dimension_semantics = [], scalar_prefetch = 0 : i64, scratch_operands = 0 : i64, tpu.core_type = #tpu.core_type<tc>} {
    %0 = tpu.iota {dimensions = array<i32: 1>} : vector<1x512xi32>
    %c0 = arith.constant 0 : index
    %1 = memref.load %arg0[%c0] : memref<2xf32, #tpu.memory_space<smem>>
    %2 = vector.broadcast %1 : f32 to vector<1x512xf32>
    %c256_i32 = arith.constant 256 : i32
    %3 = vector.broadcast %c256_i32 : i32 to vector<1x512xi32>
    %4 = arith.cmpi sge, %0, %3 : vector<1x512xi32>
    %c1 = arith.constant 1 : index
    %5 = memref.load %arg0[%c1] : memref<2xf32, #tpu.memory_space<smem>>
    %6 = vector.broadcast %5 : f32 to vector<1x512xf32>
    %7 = arith.select %4, %6, %2 : vector<1x512xi1>, vector<1x512xf32>
    %8 = math.sqrt %7 : vector<1x512xf32>
    %cst = arith.constant 1.000000e+00 : f32
    %9 = vector.broadcast %cst : f32 to vector<1x512xf32>
    %10 = arith.subf %9, %7 : vector<1x512xf32>
    %11 = math.sqrt %10 : vector<1x512xf32>
    %c0_0 = arith.constant 0 : index
    %c0_1 = arith.constant 0 : index
    %12 = vector.load %arg1[%c0_0, %c0_1] : memref<12x512xf32, #tpu.memory_space<vmem>>, vector<12x512xf32>
    %13 = tpu.iota {dimensions = array<i32: 0>} : vector<12x512xi32>
    %14 = vector.shape_cast %8 : vector<1x512xf32> to vector<1x512xf32>
    %15 = vector.broadcast %14 : vector<1x512xf32> to vector<12x512xf32>
    %16 = vector.shape_cast %11 : vector<1x512xf32> to vector<1x512xf32>
    %17 = vector.broadcast %16 : vector<1x512xf32> to vector<12x512xf32>
    %c4_i32 = arith.constant 4 : i32
    %18 = vector.broadcast %c4_i32 : i32 to vector<12x512xi32>
    %19 = arith.cmpi slt, %13, %18 : vector<12x512xi32>
    %c8_i32 = arith.constant 8 : i32
    %20 = vector.broadcast %c8_i32 : i32 to vector<12x512xi32>
    %21 = arith.cmpi slt, %13, %20 : vector<12x512xi32>
    %22 = arith.select %21, %15, %17 : vector<12x512xi1>, vector<12x512xf32>
    %cst_2 = arith.constant 1.000000e+00 : f32
    %23 = vector.broadcast %cst_2 : f32 to vector<12x512xf32>
    %24 = arith.select %19, %23, %22 : vector<12x512xi1>, vector<12x512xf32>
    %25 = arith.mulf %12, %24 : vector<12x512xf32>
    %c0_3 = arith.constant 0 : index
    %c0_4 = arith.constant 0 : index
    %26 = vector.load %arg2[%c0_3, %c0_4] : memref<32x14xf32, #tpu.memory_space<vmem>>, vector<32x12xf32>
    %c0_5 = arith.constant 0 : index
    %c12 = arith.constant 12 : index
    %27 = vector.load %arg2[%c0_5, %c12] : memref<32x14xf32, #tpu.memory_space<vmem>>, vector<32x1xf32>
    %c0_6 = arith.constant 0 : index
    %c13 = arith.constant 13 : index
    %28 = vector.load %arg2[%c0_6, %c13] : memref<32x14xf32, #tpu.memory_space<vmem>>, vector<32x1xf32>
    %cst_7 = arith.constant dense<0.000000e+00> : vector<32x512xf32>
    %29 = tpu.matmul %26, %25, %cst_7 {dimension_numbers = #tpu.dot_dimension_numbers<[1], [0], [0], [1], [0, 0, 1, 1], [], []>} : vector<32x12xf32>, vector<12x512xf32>, vector<32x512xf32> -> vector<32x512xf32>
    %30 = vector.broadcast %27 : vector<32x1xf32> to vector<32x512xf32>
    %31 = vector.broadcast %7 : vector<1x512xf32> to vector<32x512xf32>
    %32 = arith.mulf %30, %31 : vector<32x512xf32>
    %33 = arith.addf %29, %32 : vector<32x512xf32>
    %34 = vector.broadcast %28 : vector<32x1xf32> to vector<32x512xf32>
    %35 = arith.addf %33, %34 : vector<32x512xf32>
    %36 = arith.mulf %35, %35 : vector<32x512xf32>
    %37 = arith.mulf %35, %36 : vector<32x512xf32>
    %cst_8 = arith.constant 4.471500e-02 : f32
    %38 = vector.broadcast %cst_8 : f32 to vector<32x512xf32>
    %39 = arith.mulf %38, %37 : vector<32x512xf32>
    %40 = arith.addf %35, %39 : vector<32x512xf32>
    %cst_9 = arith.constant 0.797884583 : f32
    %41 = vector.broadcast %cst_9 : f32 to vector<32x512xf32>
    %42 = arith.mulf %41, %40 : vector<32x512xf32>
    %43 = math.tanh %42 : vector<32x512xf32>
    %cst_10 = arith.constant 1.000000e+00 : f32
    %44 = vector.broadcast %cst_10 : f32 to vector<32x512xf32>
    %45 = arith.addf %44, %43 : vector<32x512xf32>
    %cst_11 = arith.constant 5.000000e-01 : f32
    %46 = vector.broadcast %cst_11 : f32 to vector<32x512xf32>
    %47 = arith.mulf %46, %45 : vector<32x512xf32>
    %48 = arith.mulf %35, %47 : vector<32x512xf32>
    %c0_12 = arith.constant 0 : index
    %c0_13 = arith.constant 0 : index
    %49 = vector.load %arg3[%c0_12, %c0_13] : memref<4x33xf32, #tpu.memory_space<vmem>>, vector<4x32xf32>
    %c0_14 = arith.constant 0 : index
    %c32 = arith.constant 32 : index
    %50 = vector.load %arg3[%c0_14, %c32] : memref<4x33xf32, #tpu.memory_space<vmem>>, vector<4x1xf32>
    %cst_15 = arith.constant dense<0.000000e+00> : vector<4x512xf32>
    %51 = tpu.matmul %49, %48, %cst_15 {dimension_numbers = #tpu.dot_dimension_numbers<[1], [0], [0], [1], [0, 0, 1, 1], [], []>} : vector<4x32xf32>, vector<32x512xf32>, vector<4x512xf32> -> vector<4x512xf32>
    %52 = vector.broadcast %50 : vector<4x1xf32> to vector<4x512xf32>
    %53 = arith.addf %51, %52 : vector<4x512xf32>
    %54 = vector.extract_strided_slice %12 {offsets = [8, 0], sizes = [4, 512], strides = [1, 1]} : vector<12x512xf32> to vector<4x512xf32>
    %55 = arith.subf %54, %53 : vector<4x512xf32>
    %56 = arith.mulf %55, %55 : vector<4x512xf32>
    %57 = vector.shape_cast %56 : vector<4x512xf32> to vector<1x4x512xf32>
    %cst_16 = arith.constant dense<0.000000e+00> : vector<1xf32>
    %58 = vector.multi_reduction <add>, %57, %cst_16 [1, 2] : vector<1x4x512xf32> to vector<1xf32>
    %59 = vector.shape_cast %58 : vector<1xf32> to vector<1x1x1xf32>
    %60 = vector.extract %59[0, 0, 0] : f32 from vector<1x1x1xf32>
    %c0_17 = arith.constant 0 : index
    %c0_18 = arith.constant 0 : index
    %61 = memref.load %arg4[%c0_17, %c0_18] : memref<1x1xf32, #tpu.memory_space<smem>>
    memref.store %60, %arg4[%c0_17, %c0_18] : memref<1x1xf32, #tpu.memory_space<smem>>
    return
  }
}

</mosaic_0001>

<bundles_post_ra>
// kernel: tpu_custom_call.1
= control target key start
LH: loop header
LB: loop body
LE: loop exit
PB: predicated region body
PF: predicated region fallthrough
CT: control target
= control target key end

     0   :  { %9 = vsyncpa [#allocation5], 0  ;;  %s1226_s0 = inlined_call_operand.vmem [shape: f32[2], index: 0, kind: input, shape index: {}]   ;;  %s1227_s1 = inlined_call_operand.hbm [shape: f32[12,512], index: 1, kind: input, shape index: {}]   ;;  %s1228_s2 = inlined_call_operand.vmem [shape: f32[32,14], index: 2, kind: input, shape index: {}]   ;;  %s1229_s3 = inlined_call_operand.vmem [shape: f32[4,33], index: 3, kind: input, shape index: {}]   ;;  %s1230_s4 = inlined_call_operand.hbm [shape: f32[1,1], index: 4, kind: output, shape index: {}]  }
   0x1   :  { %10 = vsyncpa [#allocation3], 0 }
   0x2   :  { %11 = vsyncpa [#allocation4], 0  ;;  %s18_s17 = sshll.u32 %s1226_s0, 4  ;;  %s19_s17 = int_to_ptr.vmem [resolvable:$true] %s18_s17 }
   0x3   :  { %s870_s18 = scalar_lea.vmem %s19_s17, 16  ;;  %p875_p1 = scmp.lt.s32.totalorder %s19_s17, %s19_s17 }
   0x4   :  { %p871_p0 = scmp.ne.s32.totalorder %s19_s17, %s870_s18  ;;  %p876_p2 = scmp.lt.s32.totalorder %s870_s18, %s870_s18 }
   0x6   :  { %p877_p3 = por %p876_p2, %p875_p1 }
   0x8   :  { %p878_p4 = pnand %p877_p3, %p871_p0 }
   0xa   :  { %881 = shalt.err (!%p878_p4)
}
   0xb   :  { %s920_s19 = smov [#allocation2]   ;;  %s921_s20 = smov [#allocation6]  }
   0xc   :  { %21 = dma.vmem_to_smem %s19_s17, 16, %s920_s19, [#allocation5]  }
   0xd   :  { %s27_s21 = sshll.u32 %s921_s20, 4  ;;  %s882_s24 = scalar_lea.hbm %s1227_s1, 1024  ;;  %s28_s21 = int_to_ptr.vmem [resolvable:$true] %s27_s21 }
   0xe   :  { %p883_p5 = scmp.ne.s32.totalorder %s1227_s1, %s882_s24  ;;  %p886_p6 = scmp.lt.u32.totalorder %s882_s24, %s1227_s1 }
  0x10   :  { %p888_p7 = pnand %p886_p6, %p883_p5 }
  0x12   :  { %891 = shalt.err (!%p888_p7)
}
  0x13   :  { %s892_s28 = scalar_lea.vmem %s28_s21, 1024  ;;  %p897_p9 = scmp.lt.s32.totalorder %s28_s21, %s28_s21 }
  0x14   :  { %p893_p8 = scmp.ne.s32.totalorder %s28_s21, %s892_s28  ;;  %p898_p10 = scmp.lt.s32.totalorder %s892_s28, %s892_s28 }
  0x16   :  { %p899_p11 = por %p898_p10, %p897_p9 }
  0x18   :  { %p900_p12 = pnand %p899_p11, %p893_p8 }
  0x1a   :  { %903 = shalt.err (!%p900_p12)
}
  0x1b   :  { %s922_s29 = smov 512   ;;  %s923_s30 = smov 32  }
  0x1c   :  { %33 = dma.hbm_to_vmem [thread:$0]  %s1227_s1, 1024, %s28_s21, [#allocation3], %s922_s29, %s922_s29, %s923_s30  }
  0x1d   :  { %914 = dma.done.wait [#allocation5], 16  }
  0x1e   :  { %915 = vsyncadd [#allocation5], 4294967280 }
  0x1f   :  { %916 = dma.done.wait [#allocation3], 1024  }
  0x20   :  { %917 = vsyncadd [#allocation3], 4294966272 }
  0x21   :  { %44 = sfence }
  0x22   :  { %s50_s7 = sld [smem:[#allocation2]]  ;;  %s769_s8 = sld [smem:[#allocation2 + $0x1]]  ;;  %v924_v0 = vmov 0.0   ;;  %v975_v1 = vld [vmem:[%s1228_s2] sm:$0xff]  ;;  %v980_v2 = vld [vmem:[%s1228_s2 + $0x10] sm:$0xff]  ;;  %v925_v3 = vmov 12   ;;  %v130_v9 = vlaneseq }
  0x23   :  { %287 = vmatprep.mubr.f32.mxu0 %v924_v0  ;;  %376 = vmatprep.mubr.f32.mxu1 %v924_v0  ;;  %v993_v7 = vld [vmem:[%s1228_s2 + $0x8] sm:$0xff]  ;;  %v998_v8 = vld [vmem:[%s1228_s2 + $0x18] sm:$0xff]  ;;  %v926_v11 = vmov 13   ;;  %vm210_vm2 = vcmask 1043456   ;;  %v122_v21 = vld [vmem:[#allocation6] sm:$0xff]  ;;  %vm927_vm10 = vmmov 1  }
  0x24   :  { %824 = vset.pattern.permute.xlu0 %v925_v3  ;;  %825 = vset.pattern.permute.xlu1 %v925_v3  ;;  %v131_v12 = vshrl.u32 %v130_v9, 7  ;;  %v123_v22 = vld [vmem:[#allocation6 + $0x8] sm:$0xff]  ;;  %v1019_v26 = vld [vmem:[#allocation6 + $0x20] sm:$0xf]  ;;  %v124_v36 = vld [vmem:[#allocation6 + $0x10] sm:$0xff]  ;;  %vm201_vm12 = vcmask 97280  }
  0x25   :  { %167 = vperm.xlu0 %824, %v975_v1   ;;  %177 = vperm.xlu1 %825, %v980_v2   ;;  %v1021_v27 = vld [vmem:[#allocation6 + $0x28] sm:$0xf]  ;;  %v125_v37 = vld [vmem:[#allocation6 + $0x18] sm:$0xff]  ;;  %v1032_v43 = vld [vmem:[#allocation6 + $0x30] sm:$0xf]  ;;  %v928_v56 = vmov 32  }
  0x26   :  { %vm133_vm3 = vcmp.lt.s32.totalorder %v131_v12, 4  ;;  %v1034_v44 = vld [vmem:[#allocation6 + $0x38] sm:$0xf]  ;;  %vm785_vm11 = vmpackc.low %vm210_vm2, %vm927_vm10  ;;  %v1067_v55 = vld [vmem:[%s1229_s3] sm:$0xf]  ;;  %vm583_vm13 = vcmask 261120  }
  0x27   :  { %s904_s19 = scalar_lea.hbm %s1230_s4, 16 }
  0x28   :  { %v984_v4 = vstv %s50_s7  ;;  %v988_v6 = vstv %s769_s8  ;;  %p905_p13 = scmp.ne.s32.totalorder %s1230_s4, %s904_s19  ;;  %p908_p0 = scmp.lt.u32.totalorder %s904_s19, %s1230_s4 }
  0x29   :  { %830 = vrsqrt.f32 %v984_v4  ;;  %v90_v5 = vsub.f32 1.0, %v984_v4  ;;  %172 = vperm.xlu0 %824, %v993_v7   ;;  %182 = vperm.xlu1 %825, %v998_v8   ;;  %v92_v10 = vsub.f32 1.0, %v988_v6  ;;  %vm64_vm0 = vcmp.eq.f32.partialorder %v984_v4, inf }
  0x2a   :  { %832 = vrsqrt.f32 %v988_v6  ;;  %v67_v14 = vand.u32 2147483648, %v984_v4  ;;  %vm66_vm1 = vcmp.eq.f32.partialorder %v984_v4, 0.0  ;;  %vm78_vm4 = vcmp.eq.f32.partialorder %v988_v6, inf  ;;  %p910_p1 = pnand %p908_p0, %p905_p13 }
  0x2b   :  { %834 = vrsqrt.f32 %v90_v5  ;;  %vm80_vm5 = vcmp.eq.f32.partialorder %v988_v6, 0.0  ;;  %v81_v17 = vand.u32 2147483648, %v988_v6  ;;  %vm96_vm6 = vcmp.eq.f32.partialorder %v90_v5, inf }
  0x2c   :  { %836 = vrsqrt.f32 %v92_v10  ;;  %v99_v20 = vand.u32 2147483648, %v90_v5  ;;  %vm98_vm7 = vcmp.eq.f32.partialorder %v90_v5, 0.0  ;;  %vm110_vm8 = vcmp.eq.f32.partialorder %v92_v10, inf }
  0x2d   :  { %826 = vset.pattern.permute.xlu0 %v926_v11  ;;  %827 = vset.pattern.permute.xlu1 %v926_v11  ;;  %v113_v30 = vand.u32 2147483648, %v92_v10  ;;  %vm112_vm9 = vcmp.eq.f32.partialorder %v92_v10, 0.0 }
  0x2e   :  { %402 = vperm.xlu0 %826, %v975_v1   ;;  %406 = vperm.xlu1 %827, %v993_v7  }
  0x32   :  { %410 = vperm.xlu1 %827, %v980_v2   ;;  %414 = vperm.xlu0 %826, %v998_v8  }
  0x33   :  { %v831_v13 = vpop.eup %830 }
  0x34   :  { %v63_v15 = vmul.f32 %v831_v13, %v984_v4  ;;  %v833_v16 = vpop.eup %832 }
  0x35   :  { %v835_v18 = vpop.eup %834  ;;  %v77_v23 = vmul.f32 %v833_v16, %v988_v6 }
  0x36   :  { %v65_v19 = vsel %vm64_vm0, %v984_v4, %v63_v15  ;;  %v95_v25 = vmul.f32 %v835_v18, %v90_v5  ;;  %v837_v31 = vpop.eup %836  ;;  %828 = vset.pattern.permute.xlu1 %v928_v56  ;;  %829 = vset.pattern.permute.xlu0 %v928_v56 }
  0x37   :  { %v68_v24 = vsel %vm66_vm1, %v67_v14, %v65_v19  ;;  %v79_v29 = vsel %vm78_vm4, %v988_v6, %v77_v23  ;;  %v109_v39 = vmul.f32 %v837_v31, %v92_v10  ;;  %580 = vperm.xlu1 %828, %v1067_v55  }
  0x38   :  { %v145_v28 = vsel %vm133_vm3, 1.0, %v68_v24  ;;  %v97_v32 = vsel %vm96_vm6, %v90_v5, %v95_v25  ;;  %v82_v35 = vsel %vm80_vm5, %v81_v17, %v79_v29 }
  0x39   :  { %v153_v33 = vmul.f32 %v145_v28, %v122_v21  ;;  %v154_v34 = vmul.f32 %v145_v28, %v123_v22  ;;  %v100_v38 = vsel %vm98_vm7, %v99_v20, %v97_v32  ;;  %v147_v40 = vsel %vm133_vm3, 1.0, %v82_v35 }
  0x3a   :  { %v157_v41 = vmul.f32 %v1019_v26, %v100_v38  ;;  %v158_v42 = vmul.f32 %v1021_v27, %v100_v38  ;;  %v111_v45 = vsel %vm110_vm8, %v92_v10, %v109_v39  ;;  %v155_v46 = vmul.f32 %v147_v40, %v124_v36 }
  0x3b   :  { %v156_v47 = vmul.f32 %v147_v40, %v125_v37  ;;  %v114_v49 = vsel %vm112_vm9, %v113_v30, %v111_v45 }
  0x3c   :  { %v784_v48 = vpack.c.bf16 %v158_v42, %v154_v34  ;;  %v787_v50 = vpack.c.bf16 %v157_v41, %v153_v33  ;;  %v159_v51 = vmul.f32 %v1032_v43, %v114_v49  ;;  %v160_v52 = vmul.f32 %v1034_v44, %v114_v49 }
  0x3e   :  { %786 = vmatprep.subr.msk.bf16.mxu0 %vm785_vm11, %v784_v48  ;;  %v790_v53 = vpack.c.bf16 %v160_v52, %v156_v47  ;;  %v793_v54 = vpack.c.bf16 %v159_v51, %v155_v46 }
  0x3f   :  { %789 = vmatpush1.bf16.msk.msra.mxu0 %vm785_vm11, %v787_v50 }
  0x40   :  { %792 = vmatprep.subr.msk.bf16.mxu1 %vm785_vm11, %v790_v53 }
  0x41   :  { %795 = vmatpush1.bf16.msk.msra.mxu1 %vm785_vm11, %v793_v54 }
  0x42   :  { %772 = vmatmul.mubr.msk.f32.vlgmr.msra.gmra.mrb[0].mxu0 %vm201_vm12, %v975_v1 }
  0x43   :  { %293 = vmatprep.mubr.f32.mxu0 %v924_v0 }
  0x44   :  { %778 = vmatmul.mubr.msk.f32.vlgmr.msra.gmra.mrb[0].mxu1 %vm201_vm12, %v975_v1 }
  0x45   :  { %382 = vmatprep.mubr.f32.mxu1 %v924_v0 }
  0x46   :  { %773 = vmatmul.mubr.msk.f32.gmra.mrb[2].mxu0 %vm201_vm12, %v993_v7 }
  0x47   :  { %299 = vmatprep.mubr.f32.mxu0 %v924_v0 }
  0x48   :  { %779 = vmatmul.mubr.msk.f32.gmra.mrb[2].mxu1 %vm201_vm12, %v993_v7 }
  0x49   :  { %388 = vmatprep.mubr.f32.mxu1 %v924_v0 }
  0x4a   :  { %774 = vmatmul.mubr.msk.f32.gmra.mrb[4].mxu0 %vm201_vm12, %v980_v2 }
  0x4b   :  { %305 = vmatprep.mubr.f32.mxu0 %v924_v0 }
  0x4c   :  { %780 = vmatmul.mubr.msk.f32.gmra.mrb[4].mxu1 %vm201_vm12, %v980_v2 }
  0x4d   :  { %394 = vmatprep.mubr.f32.mxu1 %v924_v0 }
  0x4e   :  { %775 = vmatmul.mubr.msk.f32.gmra.mrb[6].mxu0 %vm201_vm12, %v998_v8 }
  0x4f   :  { %650 = vmatprep.mubr.f32.mxu0 %v924_v0 }
  0x50   :  { %781 = vmatmul.mubr.msk.f32.gmra.mrb[6].mxu1 %vm201_vm12, %v998_v8 }
  0x51   :  { %721 = vmatprep.mubr.f32.mxu1 %v924_v0 }
  0xa4   :  { %v168_v57 = vpop.permute.xlu0 %167  ;;  %v178_v58 = vpop.permute.xlu1 %177 }
  0xa5   :  { %v185_v60 = vmul.f32 %v168_v57, %v984_v4  ;;  %v187_v62 = vmul.f32 %v168_v57, %v988_v6  ;;  %v193_v18 = vmul.f32 %v178_v58, %v984_v4  ;;  %v195_v19 = vmul.f32 %v178_v58, %v988_v6 }
  0xa8   :  { %v173_v59 = vpop.permute.xlu0 %172  ;;  %v183_v61 = vpop.permute.xlu1 %182 }
  0xa9   :  { %v189_v1 = vmul.f32 %v173_v59, %v984_v4  ;;  %v191_v10 = vmul.f32 %v173_v59, %v988_v6  ;;  %v1090_v29 = vmul.f32 %v183_v61, %v984_v4  ;;  %v1097_v35 = vmul.f32 %v183_v61, %v988_v6 }
  0xad   :  { %v403_v0 = vpop.permute.xlu0 %402  ;;  %v407_v9 = vpop.permute.xlu1 %406 }
  0xb1   :  { %v411_v39 = vpop.permute.xlu1 %410 }
 0x115   :  { %v289_v63 = vpop.f32.mrb[0].mxu0 }
 0x116   :  { %v290_v2 = vadd.f32 %v289_v63, %v185_v60  ;;  %v291_v3 = vpop.f32.mrb[1].mxu0 }
 0x117   :  { %v378_v5 = vpop.f32.mrb[0].mxu1  ;;  %v292_v7 = vadd.f32 %v291_v3, %v185_v60 }
 0x118   :  { %v1073_v8 = vadd.f32 %v403_v0, %v290_v2  ;;  %v379_v11 = vadd.f32 %v378_v5, %v187_v62  ;;  %v380_v12 = vpop.f32.mrb[1].mxu1 }
 0x119   :  { %v295_v13 = vpop.f32.mrb[2].mxu0  ;;  %v381_v14 = vadd.f32 %v380_v12, %v187_v62  ;;  %v1082_v22 = vadd.f32 %v403_v0, %v292_v7 }
 0x11a   :  { %v433_v15 = vmul.f32 %v1073_v8, %v1073_v8  ;;  %v296_v16 = vadd.f32 %v295_v13, %v189_v1  ;;  %v297_v17 = vpop.f32.mrb[3].mxu0  ;;  %v1080_v20 = vadd.f32 %v403_v0, %v379_v11 }
 0x11b   :  { %v298_v21 = vadd.f32 %v297_v17, %v189_v1  ;;  %v1084_v23 = vadd.f32 %v403_v0, %v381_v14  ;;  %v384_v28 = vpop.f32.mrb[2].mxu1  ;;  %v434_v46 = vmul.f32 %v1082_v22, %v1082_v22 }
 0x11c   :  { %v449_v24 = vmul.f32 %v433_v15, %v1073_v8  ;;  %v1087_v25 = vadd.f32 %v407_v9, %v296_v16  ;;  %v435_v30 = vmul.f32 %v1080_v20, %v1080_v20  ;;  %v385_v31 = vadd.f32 %v384_v28, %v191_v10  ;;  %v386_v33 = vpop.f32.mrb[3].mxu1 }
 0x11d   :  { %v1094_v32 = vadd.f32 %v407_v9, %v298_v21  ;;  %v301_v34 = vpop.f32.mrb[4].mxu0  ;;  %v387_v38 = vadd.f32 %v386_v33, %v191_v10  ;;  %v436_v6 = vmul.f32 %v1084_v23, %v1084_v23  ;;  %v450_v10 = vmul.f32 %v434_v46, %v1082_v22 }
 0x11e   :  { %v465_v36 = vmul.f32 0.044715, %v449_v24  ;;  %v437_v37 = vmul.f32 %v1087_v25, %v1087_v25  ;;  %v303_v40 = vpop.f32.mrb[5].mxu0  ;;  %v451_v4 = vmul.f32 %v435_v30, %v1080_v20  ;;  %v1102_v41 = vadd.f32 %v407_v9, %v385_v31 }
 0x11f   :  { %v438_v42 = vmul.f32 %v1094_v32, %v1094_v32  ;;  %v302_v45 = vadd.f32 %v301_v34, %v193_v18  ;;  %v1111_v48 = vadd.f32 %v407_v9, %v387_v38  ;;  %v390_v49 = vpop.f32.mrb[4].mxu1  ;;  %v304_v7 = vadd.f32 %v303_v40, %v193_v18 }
 0x120   :  { %v453_v47 = vmul.f32 %v437_v37, %v1087_v25  ;;  %v467_v50 = vmul.f32 0.044715, %v451_v4  ;;  %v439_v51 = vmul.f32 %v1102_v41, %v1102_v41  ;;  %v392_v54 = vpop.f32.mrb[5].mxu1  ;;  %v481_v57 = vadd.f32 %v465_v36, %v1073_v8 }
 0x121   :  { %v454_v52 = vmul.f32 %v438_v42, %v1094_v32  ;;  %v1116_v53 = vadd.f32 %v411_v39, %v302_v45  ;;  %v307_v56 = vpop.f32.mrb[6].mxu0  ;;  %v440_v59 = vmul.f32 %v1111_v48, %v1111_v48  ;;  %v391_v60 = vadd.f32 %v390_v49, %v195_v19  ;;  %v415_v45 = vpop.permute.xlu0 %414 }
 0x122   :  { %v469_v58 = vmul.f32 0.044715, %v453_v47  ;;  %v309_v61 = vpop.f32.mrb[7].mxu0  ;;  %v483_v62 = vadd.f32 %v467_v50, %v1080_v20  ;;  %v455_v63 = vmul.f32 %v439_v51, %v1102_v41  ;;  %v452_v11 = vmul.f32 %v436_v6, %v1084_v23 }
 0x123   :  { %v470_v0 = vmul.f32 0.044715, %v454_v52  ;;  %v441_v1 = vmul.f32 %v1116_v53, %v1116_v53  ;;  %v456_v3 = vmul.f32 %v440_v59, %v1111_v48  ;;  %v1127_v5 = vadd.f32 %v411_v39, %v391_v60  ;;  %v396_v9 = vpop.f32.mrb[6].mxu1 }
 0x124   :  { %v485_v2 = vadd.f32 %v469_v58, %v1087_v25  ;;  %v471_v12 = vmul.f32 0.044715, %v455_v63  ;;  %v398_v14 = vpop.f32.mrb[7].mxu1  ;;  %v1135_v21 = vadd.f32 %v411_v39, %v304_v7  ;;  %v1137_v24 = vmul.f32 0.7978846, %v481_v57 }
 0x125   :  { %v457_v13 = vmul.f32 %v441_v1, %v1116_v53  ;;  %v486_v16 = vadd.f32 %v470_v0, %v1094_v32  ;;  %v443_v17 = vmul.f32 %v1127_v5, %v1127_v5  ;;  %v393_v30 = vadd.f32 %v392_v54, %v195_v19 }
 0x126   :  { %v501_v15 = vmul.f32 0.7978846, %v485_v2  ;;  %v487_v18 = vadd.f32 %v471_v12, %v1102_v41  ;;  %v1140_v31 = vmul.f32 0.7978846, %v483_v62  ;;  %v472_v33 = vmul.f32 0.044715, %v456_v3 }
 0x127   :  { %v473_v28 = vmul.f32 0.044715, %v457_v13  ;;  %v459_v34 = vmul.f32 %v443_v17, %v1127_v5  ;;  %v442_v36 = vmul.f32 %v1135_v21, %v1135_v21  ;;  %v1146_v40 = vadd.f32 %v411_v39, %v393_v30 }
 0x128   :  { %v503_v37 = vmul.f32 0.7978846, %v487_v18  ;;  %v308_v4 = vadd.f32 %v307_v56, %v1090_v29  ;;  %838 = vtanh.f32 %v501_v15  ;;  %v502_v42 = vmul.f32 0.7978846, %v486_v16 }
 0x129   :  { %v489_v38 = vadd.f32 %v473_v28, %v1116_v53  ;;  %v475_v46 = vmul.f32 0.044715, %v459_v34  ;;  %v397_v19 = vadd.f32 %v396_v9, %v1097_v35  ;;  %v458_v47 = vmul.f32 %v442_v36, %v1135_v21 }
 0x12a   :  { %v444_v49 = vmul.f32 %v1146_v40, %v1146_v40  ;;  %v1153_v50 = vadd.f32 %v415_v45, %v308_v4  ;;  %v488_v51 = vadd.f32 %v472_v33, %v1111_v48  ;;  %v310_v54 = vadd.f32 %v309_v61, %v1090_v29 }
 0x12b   :  { %v505_v6 = vmul.f32 0.7978846, %v489_v38  ;;  %v491_v39 = vadd.f32 %v475_v46, %v1127_v5  ;;  %v1157_v52 = vadd.f32 %v415_v45, %v397_v19  ;;  %840 = vtanh.f32 %v503_v37 }
 0x12c   :  { %v460_v56 = vmul.f32 %v444_v49, %v1146_v40  ;;  %v445_v57 = vmul.f32 %v1153_v50, %v1153_v50  ;;  %v399_v58 = vadd.f32 %v398_v14, %v1097_v35  ;;  %v1166_v62 = vadd.f32 %v415_v45, %v310_v54 }
 0x12d   :  { %842 = vtanh.f32 %v505_v6  ;;  %v507_v59 = vmul.f32 0.7978846, %v491_v39  ;;  %v447_v60 = vmul.f32 %v1157_v52, %v1157_v52  ;;  %v474_v63 = vmul.f32 0.044715, %v458_v47 }
 0x12e   :  { %v461_v0 = vmul.f32 %v445_v57, %v1153_v50  ;;  %v1169_v1 = vadd.f32 %v415_v45, %v399_v58  ;;  %v466_v29 = vmul.f32 0.044715, %v450_v10  ;;  %v504_v61 = vmul.f32 0.7978846, %v488_v51 }
 0x12f   :  { %844 = vtanh.f32 %v507_v59  ;;  %v463_v2 = vmul.f32 %v447_v60, %v1157_v52  ;;  %v446_v35 = vmul.f32 %v1166_v62, %v1166_v62  ;;  %v476_v3 = vmul.f32 0.044715, %v460_v56 }
 0x130   :  { %v477_v7 = vmul.f32 0.044715, %v461_v0  ;;  %v448_v9 = vmul.f32 %v1169_v1, %v1169_v1  ;;  %v482_v12 = vadd.f32 %v466_v29, %v1082_v22  ;;  %846 = vtanh.f32 %v502_v42 }
 0x131   :  { %v479_v13 = vmul.f32 0.044715, %v463_v2  ;;  %v462_v14 = vmul.f32 %v446_v35, %v1166_v62  ;;  %v468_v15 = vmul.f32 0.044715, %v452_v11  ;;  %v490_v10 = vadd.f32 %v474_v63, %v1135_v21 }
 0x132   :  { %v493_v16 = vadd.f32 %v477_v7, %v1153_v50  ;;  %v464_v17 = vmul.f32 %v448_v9, %v1169_v1  ;;  %v498_v18 = vmul.f32 0.7978846, %v482_v12  ;;  %v839_v28 = vpop.eup %838  ;;  %848 = vtanh.f32 %v504_v61 }
 0x133   :  { %v495_v30 = vadd.f32 %v479_v13, %v1157_v52  ;;  %v478_v33 = vmul.f32 0.044715, %v462_v14  ;;  %v484_v34 = vadd.f32 %v468_v15, %v1084_v23  ;;  %v492_v36 = vadd.f32 %v476_v3, %v1146_v40 }
 0x134   :  { %v509_v37 = vmul.f32 0.7978846, %v493_v16  ;;  %v480_v38 = vmul.f32 0.044715, %v464_v17  ;;  %850 = vtanh.f32 %v498_v18  ;;  %v506_v46 = vmul.f32 0.7978846, %v490_v10 }
 0x135   :  { %v511_v11 = vmul.f32 0.7978846, %v495_v30  ;;  %v494_v4 = vadd.f32 %v478_v33, %v1166_v62  ;;  %v500_v42 = vmul.f32 0.7978846, %v484_v34  ;;  %852 = vtanh.f32 %v1137_v24  ;;  %v841_v45 = vpop.eup %840 }
 0x136   :  { %854 = vtanh.f32 %v509_v37  ;;  %v496_v19 = vadd.f32 %v480_v38, %v1169_v1  ;;  %v508_v49 = vmul.f32 0.7978846, %v492_v36  ;;  %v533_v54 = vadd.f32 1.0, %v839_v28 }
 0x137   :  { %v843_v6 = vpop.eup %842  ;;  %856 = vtanh.f32 %v511_v11  ;;  %v510_v47 = vmul.f32 0.7978846, %v494_v4  ;;  %v535_v56 = vadd.f32 1.0, %v841_v45 }
 0x138   :  { %858 = vtanh.f32 %v500_v42  ;;  %v512_v39 = vmul.f32 0.7978846, %v496_v19  ;;  %v537_v57 = vadd.f32 1.0, %v843_v6  ;;  %v549_v63 = vmul.f32 0.5, %v533_v54 }
 0x139   :  { %v845_v51 = vpop.eup %844  ;;  %860 = vtanh.f32 %v1140_v31  ;;  %v551_v2 = vmul.f32 0.5, %v535_v56 }
 0x13a   :  { %862 = vtanh.f32 %v506_v46  ;;  %v847_v58 = vpop.eup %846  ;;  %v539_v24 = vadd.f32 1.0, %v845_v51  ;;  %v553_v35 = vmul.f32 0.5, %v537_v57  ;;  %v565_v16 = vmul.f32 %v549_v63, %v1087_v25 }
 0x13b   :  { %864 = vtanh.f32 %v510_v47  ;;  %v534_v59 = vadd.f32 1.0, %v847_v58  ;;  %v567_v30 = vmul.f32 %v551_v2, %v1102_v41 }
 0x13c   :  { %866 = vtanh.f32 %v508_v49  ;;  %v849_v60 = vpop.eup %848  ;;  %v555_v9 = vmul.f32 0.5, %v539_v24  ;;  %v569_v33 = vmul.f32 %v553_v35, %v1116_v53 }
 0x13d   :  { %868 = vtanh.f32 %v512_v39  ;;  %v550_v29 = vmul.f32 0.5, %v534_v59  ;;  %v536_v61 = vadd.f32 1.0, %v849_v60 }
 0x13e   :  { %v851_v0 = vpop.eup %850  ;;  %v571_v4 = vmul.f32 %v555_v9, %v1127_v5 }
 0x13f   :  { %v853_v3 = vpop.eup %852  ;;  %v530_v7 = vadd.f32 1.0, %v851_v0  ;;  %v552_v12 = vmul.f32 0.5, %v536_v61  ;;  %v566_v10 = vmul.f32 %v550_v29, %v1094_v32 }
 0x140   :  { %v855_v31 = vpop.eup %854  ;;  %v529_v13 = vadd.f32 1.0, %v853_v3 }
 0x141   :  { %v857_v14 = vpop.eup %856  ;;  %v546_v15 = vmul.f32 0.5, %v530_v7  ;;  %v541_v17 = vadd.f32 1.0, %v855_v31  ;;  %v568_v32 = vmul.f32 %v552_v12, %v1111_v48 }
 0x142   :  { %v859_v18 = vpop.eup %858  ;;  %v545_v28 = vmul.f32 0.5, %v529_v13  ;;  %v543_v34 = vadd.f32 1.0, %v857_v14 }
 0x143   :  { %v861_v36 = vpop.eup %860  ;;  %v562_v37 = vmul.f32 %v546_v15, %v1082_v22  ;;  %v532_v38 = vadd.f32 1.0, %v859_v18  ;;  %v557_v11 = vmul.f32 0.5, %v541_v17 }
 0x144   :  { %v863_v42 = vpop.eup %862  ;;  %v561_v25 = vmul.f32 %v545_v28, %v1073_v8  ;;  %v531_v45 = vadd.f32 1.0, %v861_v36  ;;  %v559_v46 = vmul.f32 0.5, %v543_v34 }
 0x145   :  { %v865_v19 = vpop.eup %864  ;;  %v796_v6 = vpack.c.bf16 %v566_v10, %v562_v37  ;;  %v548_v41 = vmul.f32 0.5, %v532_v38  ;;  %v538_v47 = vadd.f32 1.0, %v863_v42  ;;  %v573_v53 = vmul.f32 %v557_v11, %v1153_v50 }
 0x146   :  { %v867_v49 = vpop.eup %866  ;;  %v798_v51 = vpack.c.bf16 %v565_v16, %v561_v25  ;;  %v547_v22 = vmul.f32 0.5, %v531_v45  ;;  %v542_v39 = vadd.f32 1.0, %v865_v19  ;;  %v575_v54 = vmul.f32 %v559_v46, %v1157_v52 }
 0x147   :  { %v869_v5 = vpop.eup %868  ;;  %797 = vmatprep.subr.bf16.mxu0 %v796_v6  ;;  %v564_v48 = vmul.f32 %v548_v41, %v1084_v23  ;;  %v554_v56 = vmul.f32 0.5, %v538_v47  ;;  %v540_v8 = vadd.f32 1.0, %v867_v49  ;;  %v802_v57 = vpack.c.bf16 %v573_v53, %v569_v33 }
 0x148   :  { %799 = vmatpush1.bf16.msra.mxu0 %v798_v51  ;;  %v563_v58 = vmul.f32 %v547_v22, %v1080_v20  ;;  %v558_v24 = vmul.f32 0.5, %v542_v39  ;;  %v544_v59 = vadd.f32 1.0, %v869_v5  ;;  %v810_v60 = vpack.c.bf16 %v575_v54, %v571_v4 }
 0x149   :  { %v804_v50 = vpack.c.bf16 %v568_v32, %v564_v48  ;;  %v556_v63 = vmul.f32 0.5, %v540_v8  ;;  %v570_v29 = vmul.f32 %v554_v56, %v1135_v21  ;;  %v581_v21 = vpop.permute.xlu1 %580 }
 0x14a   :  { %v806_v0 = vpack.c.bf16 %v567_v30, %v563_v58  ;;  %v574_v52 = vmul.f32 %v558_v24, %v1166_v62  ;;  %v560_v61 = vmul.f32 0.5, %v544_v59 }
 0x14b   :  { %805 = vmatprep.subr.bf16.mxu1 %v804_v50  ;;  %v572_v2 = vmul.f32 %v556_v63, %v1146_v40 }
 0x14c   :  { %807 = vmatpush1.bf16.msra.mxu1 %v806_v0  ;;  %v800_v23 = vpack.c.bf16 %v574_v52, %v570_v29  ;;  %v576_v35 = vmul.f32 %v560_v61, %v1169_v1 }
 0x14e   :  { %801 = vmatprep.subr.bf16.mxu0 %v800_v23  ;;  %v808_v20 = vpack.c.bf16 %v576_v35, %v572_v2 }
 0x14f   :  { %803 = vmatpush1.bf16.msra.mxu0 %v802_v57 }
 0x150   :  { %809 = vmatprep.subr.bf16.mxu1 %v808_v20 }
 0x151   :  { %811 = vmatpush1.bf16.msra.mxu1 %v810_v60 }
 0x152   :  { %782 = vmatmul.mubr.msk.f32.vlgmr.msra.gmra.mrb[8].mxu0 %vm583_vm13, %v1067_v55 }
 0x154   :  { %783 = vmatmul.mubr.msk.f32.vlgmr.msra.gmra.mrb[8].mxu1 %vm583_vm13, %v1067_v55 }
 0x225   :  { %v652_v62 = vpop.f32.mrb[8].mxu0 }
 0x226   :  { %v653_v3 = vadd.f32 %v652_v62, %v581_v21  ;;  %v654_v7 = vpop.f32.mrb[9].mxu0 }
 0x227   :  { %v655_v9 = vadd.f32 %v654_v7, %v581_v21  ;;  %v723_v31 = vpop.f32.mrb[8].mxu1 }
 0x228   :  { %v728_v40 = vsub.f32 %v1019_v26, %v653_v3  ;;  %v724_v12 = vadd.f32 %v723_v31, %v581_v21  ;;  %v725_v1 = vpop.f32.mrb[9].mxu1 }
 0x229   :  { %v729_v13 = vsub.f32 %v1021_v27, %v655_v9  ;;  %v726_v14 = vadd.f32 %v725_v1, %v581_v21 }
 0x22a   :  { %v732_v15 = vmul.f32 %v728_v40, %v728_v40  ;;  %v730_v10 = vsub.f32 %v1032_v43, %v724_v12 }
 0x22b   :  { %v733_v16 = vmul.f32 %v729_v13, %v729_v13  ;;  %v731_v17 = vsub.f32 %v1034_v44, %v726_v14 }
 0x22c   :  { %v734_v55 = vmul.f32 %v730_v10, %v730_v10  ;;  %v736_v18 = vsel %vm210_vm2, %v732_v15, 0.0 }
 0x22d   :  { %v737_v28 = vsel %vm210_vm2, %v733_v16, 0.0  ;;  %v735_v30 = vmul.f32 %v731_v17, %v731_v17 }
 0x22e   :  { %v738_v33 = vadd.f32 %v737_v28, %v736_v18  ;;  %v739_v26 = vsel %vm210_vm2, %v734_v55, 0.0 }
 0x22f   :  { %v741_v36 = vsel %vm210_vm2, %v735_v30, 0.0 }
 0x230   :  { %v740_v34 = vadd.f32 %v739_v26, %v738_v33 }
 0x232   :  { %v742_v27 = vadd.f32 %v741_v36, %v740_v34 }
 0x234   :  { %743 = vadd.xlane.f32.xlu0 %v742_v27 }
 0x2c1   :  { %v744_v37 = vpop.xlane.xlu0 %743 }
 0x2c2   :  { %v745_v38 = vrot.slane %v744_v37, 4 }
 0x2c4   :  { %v746_v43 = vadd.f32 %v745_v38, %v744_v37 }
 0x2c6   :  { %v747_v11 = vrot.slane %v746_v43, 2 }
 0x2c8   :  { %v748_v4 = vadd.f32 %v747_v11, %v746_v43 }
 0x2ca   :  { %v749_v44 = vrot.slane %v748_v4, 1 }
 0x2cc   :  { %v750_v42 = vadd.f32 %v749_v44, %v748_v4 }
 0x2ce   :  { %812 = vpush %v750_v42 }
 0x2ff   :  { %s813_s3 = spop %812 }
 0x300   :  { %753 = sst [smem:[#allocation7]] %s813_s3 }
 0x301   :  { %913 = shalt.err (!%p910_p1)
}
 0x302   :  { %s929_s24 = smov [#allocation7]  }
 0x303   :  { %761 = dma.smem_to_hbm %s929_s24, 16, %s1230_s4, [#allocation4]  }
 0x304   :  { %918 = dma.done.wait [#allocation4], 16  }
 0x305   :  { %919 = vsyncadd [#allocation4], 4294967280 }
 0x306   :  { %765 = sfence }
 0x307   :  { %766 = vsyncpa [#allocation3], 1 }
 0x308   :  { %767 = vsyncpa [#allocation4], 1 }
 0x309   :  { %768 = vsyncpa [#allocation5], 1 }

</bundles_post_ra>
